<compile_context>
chip_gen: v6e
topology: v6e:2x2x1
jax: 0.10.0
libtpu: 0.0.40
codegen_flags: <defaults>
</compile_context>

<pallas_src>
import functools
import math

import jax
import jax.numpy as jnp
from jax.experimental import pallas as pl
from jax.experimental.pallas import tpu as pltpu


def _upsample_kernel(x_ref, rep_ref, o_ref, *, precision):
    """x:(TM, g*W)  rep:(g*W, g*fh*fw*W)  o:(TM, g*fh*fw*W).

    One one-hot matmul on the MXU performs both the row (fh) and column (fw)
    nearest-neighbour replication; the store is lane-dense and unmasked.
    """
    o_ref[...] = jnp.dot(
        x_ref[...], rep_ref[...],
        preferred_element_type=jnp.float32,
        precision=precision,
    ).astype(o_ref.dtype)


def _fused_replication_matrix(w, fh, fw, g, dtype):
    """(g*W, g*fh*fw*W) one-hot matrix R implementing, per kernel row,

        out[p*fh*fw*W + s*fw*W + j] = x[p*W + j//fw]   (p<g, s<fh, j<fw*W)

    i.e. `g` input rows folded into the lane axis, each replicated fh times
    (row upsample) with every column replicated fw times (column upsample)."""
    gw, out_w = g * w, g * fh * fw * w
    k = jnp.arange(gw, dtype=jnp.int32)[:, None]       # source lane in x
    t = jnp.arange(out_w, dtype=jnp.int32)[None, :]    # destination lane
    p = t // (fh * fw * w)                             # which folded input row
    j = t % (fw * w)                                   # column inside one up-row
    src = p * w + j // fw
    return (src == k).astype(dtype)


def _pick_fold(w, fh, fw, m):
    """Smallest g making the output lane axis (g*fh*fw*W) a multiple of 128."""
    g = 128 // math.gcd(fh * fw * w, 128)
    return g if (m % g == 0) else 1


def _pick_row_tile(m_rows, out_row_bytes, *, align,
                   target_block_bytes=2 << 20, min_steps=2):
    """Row tile: ~MiB-scale output blocks, but always >= min_steps grid steps
    (v7x megacore sharding + DMA/compute overlap). Never falls back to a
    single full-array block; the grid uses pl.cdiv so no exact divisor is
    required."""
    if m_rows <= align:
        return m_rows
    tm_budget = max(align,
                    (target_block_bytes // max(out_row_bytes, 1)) // align * align)
    tm_steps = max(align, pl.cdiv(m_rows, min_steps) // align * align)
    tm_full = max(align, m_rows // align * align)
    return min(tm_budget, tm_steps, tm_full)


def upsample2_nearest(x, scale_factor, mode="nearest"):
    """Forward of Upsample2: F.interpolate(x, scale_factor, mode='nearest')."""
    # TODO(synk): only mode='nearest' with integer scale factors is implemented
    # (the AdaIN generator uses Upsample2(scale_factor=2)).
    assert mode == "nearest", "only nearest-neighbour mode is implemented"
    if isinstance(scale_factor, (tuple, list)):
        sfh, sfw = scale_factor
    else:
        sfh = sfw = scale_factor
    fh, fw = int(sfh), int(sfw)
    assert fh == sfh and fw == sfw and fh >= 1 and fw >= 1, \
        "integer scale factors only"

    n, c, h, w = x.shape
    m = n * c * h

    # One-hot selection of bf16 values is exact without HIGHEST; genuine f32
    # needs Precision.HIGHEST on the MXU to stay bit-exact vs. jnp.repeat.
    if x.dtype == jnp.bfloat16:
        precision, rep_dtype, align = None, jnp.bfloat16, 16
    else:
        precision, rep_dtype, align = jax.lax.Precision.HIGHEST, jnp.float32, 8
        # TODO(synk): integer inputs ride the f32 MXU path (exact only to 2^24).

    # Fold g input rows into each kernel row so the OUTPUT lane axis is a
    # multiple of 128 even for small feature maps (unmasked vst).
    g = _pick_fold(w, fh, fw, m)
    m_rows = m // g
    in_w = g * w
    out_w = g * fh * fw * w

    x2d = x.reshape(m_rows, in_w)                        # free (contiguous)
    # Fused replication matrix is small now (no (TM*fh, TM) operand); default
    # double-buffering of this constant costs only a few tens of KiB.
    # TODO(synk): very large W (>~512) would want the lane axis tiled too.
    rep = _fused_replication_matrix(w, fh, fw, g, rep_dtype)

    out_row_bytes = out_w * x.dtype.itemsize
    tm = _pick_row_tile(m_rows, out_row_bytes, align=align)
    grid = (pl.cdiv(m_rows, tm),)

    out2d = pl.pallas_call(
        functools.partial(_upsample_kernel, precision=precision),
        out_shape=jax.ShapeDtypeStruct((m_rows, out_w), x.dtype),
        grid_spec=pltpu.PrefetchScalarGridSpec(
            num_scalar_prefetch=0,
            grid=grid,
            in_specs=[
                pl.BlockSpec((tm, in_w), lambda i: (i, 0)),
                pl.BlockSpec((in_w, out_w), lambda i: (0, 0)),
            ],
            out_specs=pl.BlockSpec((tm, out_w), lambda i: (i, 0)),
        ),
        compiler_params=pltpu.CompilerParams(
            dimension_semantics=("parallel",),
            vmem_limit_bytes=32 * 1024 * 1024,
        ),
    )(x2d, rep)

    # (M/g, g*fh*W*fw) is exactly the contiguous layout of the NCHW output.
    return out2d.reshape(n, c, h * fh, w * fw)           # free (contiguous)


if __name__ == "__main__":
    # Small deterministic setup consistent with the module: NCHW input,
    # batch=2, channels=4, spatial=16x16, scale_factor=2 (nearest).
    N, C, H, W = 2, 4, 16, 16
    factor = 2
    key = jax.random.PRNGKey(0)
    x = jax.random.normal(key, (N, C, H, W), jnp.float32)

    fwd = jax.jit(functools.partial(upsample2_nearest, scale_factor=factor))
    out = fwd(x)
    jax.block_until_ready(out)

    assert out.shape == (N, C, H * factor, W * factor)
    ref = jnp.repeat(jnp.repeat(x, factor, axis=2), factor, axis=3)
    assert jnp.allclose(out, ref, rtol=0.0, atol=1e-6), \
        "Pallas upsample mismatch vs nearest-neighbour reference"
    print("KERNEL_OK")
</pallas_src>

<mosaic_0001>
module attributes {stable_mosaic.version = 11 : i64} {
  func.func @_upsample_kernel(%arg0: i32, %arg1: memref<32x32xf32, #tpu.memory_space<vmem>>, %arg2: memref<32x128xf32, #tpu.memory_space<vmem>>, %arg3: memref<32x128xf32, #tpu.memory_space<vmem>>) attributes {dimension_semantics = [#tpu.dimension_semantics<parallel>], iteration_bounds = array<i64: 2>, scalar_prefetch = 0 : i64, scratch_operands = 0 : i64, tpu.core_type = #tpu.core_type<tc>, window_params = [{transform_indices = @transform_0, window_bounds = array<i64: 32, 32>}, {pipeline_mode = #tpu.pipeline_mode<synchronous>, transform_indices = @transform_1, window_bounds = array<i64: 32, 128>}, {transform_indices = @transform_2, window_bounds = array<i64: 32, 128>}]} {
    %c0 = arith.constant 0 : index
    %c0_0 = arith.constant 0 : index
    %0 = vector.load %arg1[%c0, %c0_0] : memref<32x32xf32, #tpu.memory_space<vmem>>, vector<32x32xf32>
    %c0_1 = arith.constant 0 : index
    %c0_2 = arith.constant 0 : index
    %1 = vector.load %arg2[%c0_1, %c0_2] : memref<32x128xf32, #tpu.memory_space<vmem>>, vector<32x128xf32>
    %cst = arith.constant dense<0.000000e+00> : vector<32x128xf32>
    %2 = tpu.matmul %0, %1, %cst {dimension_numbers = #tpu.dot_dimension_numbers<[1], [0], [0], [1], [0, 0, 1, 1], [], []>, precision = #tpu.contract_precision<fp32>} : vector<32x32xf32>, vector<32x128xf32>, vector<32x128xf32> -> vector<32x128xf32>
    %c0_3 = arith.constant 0 : index
    %c0_4 = arith.constant 0 : index
    %3 = vector.load %arg3[%c0_3, %c0_4] : memref<32x128xf32, #tpu.memory_space<vmem>>, vector<32x128xf32>
    tpu.vector_store %arg3[%c0_3, %c0_4], %2 {strides = array<i32>} : memref<32x128xf32, #tpu.memory_space<vmem>>, vector<32x128xf32>,
    return
  }
  func.func @transform_0(%arg0: i32) -> (i32, i32) {
    %c0_i32 = arith.constant 0 : i32
    %c0_i32_0 = arith.constant 0 : i32
    return %arg0, %c0_i32 : i32, i32
  }
  func.func @transform_1(%arg0: i32) -> (i32, i32) {
    %c0_i32 = arith.constant 0 : i32
    %c0_i32_0 = arith.constant 0 : i32
    %c0_i32_1 = arith.constant 0 : i32
    return %c0_i32, %c0_i32_0 : i32, i32
  }
  func.func @transform_2(%arg0: i32) -> (i32, i32) {
    %c0_i32 = arith.constant 0 : i32
    %c0_i32_0 = arith.constant 0 : i32
    return %arg0, %c0_i32 : i32, i32
  }
}

</mosaic_0001>

<bundles_post_ra>
// kernel: upsample2_nearest.1
= control target key start
LH: loop header
LB: loop body
LE: loop exit
PB: predicated region body
PF: predicated region fallthrough
CT: control target
= control target key end

     0   :  { %s1016_s9 = smov 0   ;;  %s1160_s0 = inlined_call_operand.vmem [shape: f32[64,32], index: 0, kind: input, shape index: {}]   ;;  %s1161_s1 = inlined_call_operand.vmem [shape: f32[32,128], index: 1, kind: input, shape index: {}]   ;;  %s1162_s2 = inlined_call_operand.vmem [shape: f32[64,128], index: 2, kind: output, shape index: {}]  }
   0x1 LB: > { %s842_s10 = sadd.s32 4294967295, %s999_s9   ;;  %p846_p0 = scmp.ge.s32.totalorder %s999_s9, 1  ;;  %s999_s9 = sphi %s1016_s9, %s12_s9  }
   0x2   : > { %p113_p1 = scmp.lt.s32.totalorder %s999_s9, 3 }
   0x4   : > { %p114_p2 = pnand %p846_p0, %p113_p1 }
   0x5   : > { %s847_s17 = sshll.u32 (!%p114_p2), %s842_s10, 2 }
   0x6   : > { %117 = sbr.rel (%p114_p2) target bundleno = 256 (0x100), region = 28  ;;  %p136_p3 = scmp.lt.s32.totalorder (!%p114_p2), %s847_s17, 7 }
   0xb   : > { %v154_v0 = vld [vmem:[%s1161_s1 + $0x18] sm:$0xff]  ;;  %v153_v1 = vld [vmem:[%s1161_s1 + $0x10] sm:$0xff]  ;;  %v152_v2 = vld [vmem:[%s1161_s1 + $0x8] sm:$0xff]  ;;  %s1164_s17 = smov (!%p136_p3, %s847_s17), 7  ;;  %vm155_vm0 = vcmask 261120  }
   0xc   : > { %v1033_v3 = vand.u32 4294901760, %v154_v0  ;;  %v1035_v4 = vand.u32 4294901760, %v153_v1  ;;  %v1037_v5 = vand.u32 4294901760, %v152_v2  ;;  %v151_v6 = vld [vmem:[%s1161_s1] sm:$0xff]  ;;  %s848_s20 = sshll.u32 %s1164_s17, 3 }
   0xd   : > { %v1042_v7 = vand.u32 4294901760, %v151_v6  ;;  %s139_s23 = scalar_lea.vmem %s1160_s0, %s848_s20  ;;  %s145_s26 = scalar_lea.vmem %s1162_s2, %s848_s20 }
   0xe   : > { %901 = vmatprep.subr.mxu0 %v1033_v3  ;;  %v1046_v8 = vsub.f32 %v154_v0, %v1033_v3  ;;  %v1049_v9 = vsub.f32 %v153_v1, %v1035_v4  ;;  %v1052_v10 = vsub.f32 %v152_v2, %v1037_v5  ;;  %v147_v19 = vld [vmem:[%s139_s23] sm:$0xff]  ;;  %v148_v20 = vld [vmem:[%s139_s23 + $0x8] sm:$0xff]  ;;  %v149_v21 = vld [vmem:[%s139_s23 + $0x10] sm:$0xff] }
   0xf   : > { %902 = vmatpush3.msra.mxu0 %v1033_v3  ;;  %v1058_v11 = vsub.f32 %v151_v6, %v1042_v7  ;;  %v157_v22 = vsel %vm155_vm0, %v147_v19, 0  ;;  %v160_v23 = vsel %vm155_vm0, %v148_v20, 0  ;;  %v163_v24 = vsel %vm155_vm0, %v149_v21, 0  ;;  %v150_v25 = vld [vmem:[%s139_s23 + $0x18] sm:$0xff] }
  0x10   : > { %v1061_v12 = vand.u32 4294901760, %v1046_v8  ;;  %903 = vmatprep.subr.mxu0 %v1035_v4  ;;  %v1065_v13 = vand.u32 4294901760, %v1049_v9  ;;  %v1068_v14 = vand.u32 4294901760, %v1052_v10  ;;  %v1094_v29 = vand.u32 4294901760, %v157_v22 }
  0x11   : > { %904 = vmatpush3.msra.mxu0 %v1035_v4  ;;  %v1073_v15 = vand.u32 4294901760, %v1058_v11  ;;  %v1097_v30 = vand.u32 4294901760, %v160_v23  ;;  %v1099_v31 = vand.u32 4294901760, %v163_v24  ;;  %v166_v32 = vsel %vm155_vm0, %v150_v25, 0 }
  0x12   : > { %v305_v16 = vsub.f32 %v1046_v8, %v1061_v12  ;;  %v312_v17 = vsub.f32 %v1049_v9, %v1065_v13  ;;  %905 = vmatprep.subr.mxu0 %v1037_v5  ;;  %v319_v18 = vsub.f32 %v1052_v10, %v1068_v14  ;;  %v238_v34 = vsub.f32 %v157_v22, %v1094_v29 }
  0x13   : > { %906 = vmatpush3.msra.mxu0 %v1037_v5  ;;  %v326_v28 = vsub.f32 %v1058_v11, %v1073_v15  ;;  %923 = vmatprep.mubr.f32.mxu1 %v1094_v29  ;;  %v1104_v35 = vand.u32 4294901760, %v166_v32  ;;  %v248_v36 = vsub.f32 %v160_v23, %v1097_v30  ;;  %v258_v37 = vsub.f32 %v163_v24, %v1099_v31 }
  0x14   : > { %v306_v26 = vand.u32 4294901760, %v305_v16  ;;  %v313_v27 = vand.u32 4294901760, %v312_v17  ;;  %907 = vmatprep.subr.mxu0 %v1042_v7  ;;  %v320_v33 = vand.u32 4294901760, %v319_v18  ;;  %v239_v39 = vand.u32 4294901760, %v238_v34 }
  0x15   : > { %908 = vmatpush3.msra.mxu0 %v1042_v7  ;;  %v327_v38 = vand.u32 4294901760, %v326_v28  ;;  %v268_v40 = vsub.f32 %v166_v32, %v1104_v35  ;;  %v249_v41 = vand.u32 4294901760, %v248_v36  ;;  %v259_v42 = vand.u32 4294901760, %v258_v37 }
  0x16   : > { %915 = vmatprep.subr.mxu1 %v306_v26  ;;  %929 = vmatprep.subr.mxu0 %v1046_v8  ;;  %v240_v43 = vsub.f32 %v238_v34, %v239_v39 }
  0x17   : > { %916 = vmatpush3.msra.mxu1 %v306_v26  ;;  %v269_v44 = vand.u32 4294901760, %v268_v40  ;;  %v250_v45 = vsub.f32 %v248_v36, %v249_v41  ;;  %v260_v46 = vsub.f32 %v258_v37, %v259_v42 }
  0x18   : > { %917 = vmatprep.subr.mxu1 %v313_v27  ;;  %v241_v47 = vand.u32 4294901760, %v240_v43 }
  0x19   : > { %918 = vmatpush3.msra.mxu1 %v313_v27  ;;  %v270_v48 = vsub.f32 %v268_v40, %v269_v44  ;;  %v251_v49 = vand.u32 4294901760, %v250_v45  ;;  %v261_v50 = vand.u32 4294901760, %v260_v46 }
  0x1a   : > { %919 = vmatprep.subr.mxu1 %v320_v33  ;;  %909 = vmatprep.mubr.f32.mxu0 %v241_v47 }
  0x1b   : > { %920 = vmatpush3.msra.mxu1 %v320_v33  ;;  %910 = vmatmul.mubr.f32.vlgmr.msra.gmra.mxu0 %v251_v49  ;;  %v271_v51 = vand.u32 4294901760, %v270_v48 }
  0x1c   : > { %921 = vmatprep.subr.mxu1 %v327_v38  ;;  %930 = vmatpush3.msra.mxu0 %v1046_v8 }
  0x1d   : > { %922 = vmatpush3.msra.mxu1 %v327_v38  ;;  %931 = vmatprep.subr.mxu0 %v1049_v9 }
  0x1e   : > { %924 = vmatmul.mubr.f32.vlgmr.msra.gmra.mxu1 %v1097_v30  ;;  %943 = vmatprep.subr.mxu1 %v1033_v3 }
  0x1f   : > { %944 = vmatpush3.msra.mxu1 %v1033_v3  ;;  %932 = vmatpush3.msra.mxu0 %v1049_v9 }
  0x20   : > { %945 = vmatprep.subr.mxu1 %v1035_v4  ;;  %912 = vmatprep.mubr.f32.mxu0 %v261_v50 }
  0x21   : > { %926 = vmatprep.mubr.f32.mxu1 %v1099_v31  ;;  %933 = vmatprep.subr.mxu0 %v1052_v10 }
  0x22   : > { %946 = vmatpush3.msra.mxu1 %v1035_v4  ;;  %913 = vmatmul.mubr.f32.gmra.mxu0 %v271_v51 }
  0x23   : > { %927 = vmatmul.mubr.f32.gmra.mxu1 %v1104_v35  ;;  %934 = vmatpush3.msra.mxu0 %v1052_v10 }
  0x24   : > { %947 = vmatprep.subr.mxu1 %v1037_v5  ;;  %935 = vmatprep.subr.mxu0 %v1058_v11 }
  0x25   : > { %948 = vmatpush3.msra.mxu1 %v1037_v5  ;;  %936 = vmatpush3.msra.mxu0 %v1058_v11 }
  0x26   : > { %949 = vmatprep.subr.mxu1 %v1042_v7  ;;  %937 = vmatprep.mubr.f32.mxu0 %v238_v34 }
  0x27   : > { %950 = vmatpush3.msra.mxu1 %v1042_v7  ;;  %951 = vmatprep.mubr.f32.mxu1 %v239_v39 }
  0x28   : > { %957 = vmatprep.subr.mxu0 %v1061_v12  ;;  %938 = vmatmul.mubr.f32.vlgmr.msra.gmra.mxu0 %v248_v36 }
  0x29   : > { %952 = vmatmul.mubr.f32.vlgmr.msra.gmra.mxu1 %v249_v41  ;;  %958 = vmatpush3.msra.mxu0 %v1061_v12 }
  0x2a   : > { %971 = vmatprep.subr.mxu1 %v1033_v3  ;;  %959 = vmatprep.subr.mxu0 %v1065_v13 }
  0x2b   : > { %972 = vmatpush3.msra.mxu1 %v1033_v3  ;;  %960 = vmatpush3.msra.mxu0 %v1065_v13 }
  0x2c   : > { %973 = vmatprep.subr.mxu1 %v1035_v4  ;;  %940 = vmatprep.mubr.f32.mxu0 %v258_v37 }
  0x2d   : > { %954 = vmatprep.mubr.f32.mxu1 %v259_v42  ;;  %961 = vmatprep.subr.mxu0 %v1068_v14 }
  0x2e   : > { %974 = vmatpush3.msra.mxu1 %v1035_v4  ;;  %941 = vmatmul.mubr.f32.gmra.mxu0 %v268_v40 }
  0x2f   : > { %955 = vmatmul.mubr.f32.gmra.mxu1 %v269_v44  ;;  %962 = vmatpush3.msra.mxu0 %v1068_v14 }
  0x30   : > { %975 = vmatprep.subr.mxu1 %v1037_v5  ;;  %963 = vmatprep.subr.mxu0 %v1073_v15 }
  0x31   : > { %976 = vmatpush3.msra.mxu1 %v1037_v5  ;;  %964 = vmatpush3.msra.mxu0 %v1073_v15 }
  0x32   : > { %977 = vmatprep.subr.mxu1 %v1042_v7  ;;  %965 = vmatprep.mubr.f32.mxu0 %v1094_v29 }
  0x33   : > { %978 = vmatpush3.msra.mxu1 %v1042_v7  ;;  %979 = vmatprep.mubr.f32.mxu1 %v1094_v29 }
  0x34   : > { %966 = vmatmul.mubr.f32.vlgmr.msra.gmra.mxu0 %v1097_v30  ;;  %980 = vmatmul.mubr.f32.vlgmr.msra.gmra.mxu1 %v1097_v30 }
  0x35   : > { %968 = vmatprep.mubr.f32.mxu0 %v1099_v31  ;;  %982 = vmatprep.mubr.f32.mxu1 %v1099_v31 }
  0x38   : > { %969 = vmatmul.mubr.f32.gmra.mxu0 %v1104_v35  ;;  %983 = vmatmul.mubr.f32.gmra.mxu1 %v1104_v35 }
  0xdb   : > { %v911_v53 = vpop.f32.mrf.mxu0 }
  0xdd   : > { %v243_v54 = vpop.f32.mrf.mxu0 }
  0xde   : > { %v925_v52 = vpop.f32.mrf.mxu1 }
  0xdf   : > { %v371_v0 = vadd.f32 %v925_v52, %v911_v53 }
  0xe0   : > { %v364_v55 = vpop.f32.mrf.mxu1 }
  0xe1   : > { %v365_v2 = vadd.f32 %v364_v55, %v243_v54 }
  0xe2   : > { %v914_v56 = vpop.f32.mrf.mxu0 }
  0xe3   : > { %v928_v57 = vpop.f32.mrf.mxu1 }
  0xe4   : > { %v263_v58 = vpop.f32.mrf.mxu0  ;;  %v383_v8 = vadd.f32 %v928_v57, %v914_v56 }
  0xe5   : > { %v376_v59 = vpop.f32.mrf.mxu1 }
  0xe6   : > { %v377_v9 = vadd.f32 %v376_v59, %v263_v58 }
  0xe8   : > { %v939_v60 = vpop.f32.mrf.mxu0 }
  0xe9   : > { %v953_v61 = vpop.f32.mrf.mxu1  ;;  %v470_v4 = vadd.f32 %v939_v60, %v371_v0 }
  0xea   : > { %v462_v62 = vpop.f32.mrf.mxu0 }
  0xeb   : > { %v560_v63 = vpop.f32.mrf.mxu1  ;;  %v463_v6 = vadd.f32 %v462_v62, %v365_v2  ;;  %v569_v10 = vadd.f32 %v953_v61, %v470_v4 }
  0xed   : > { %v561_v14 = vadd.f32 %v560_v63, %v463_v6 }
  0xee   : > { %v942_v1 = vpop.f32.mrf.mxu0 }
  0xef   : > { %v956_v3 = vpop.f32.mrf.mxu1  ;;  %v484_v11 = vadd.f32 %v942_v1, %v383_v8 }
  0xf0   : > { %v476_v5 = vpop.f32.mrf.mxu0 }
  0xf1   : > { %v576_v7 = vpop.f32.mrf.mxu1  ;;  %v477_v15 = vadd.f32 %v476_v5, %v377_v9  ;;  %v585_v20 = vadd.f32 %v956_v3, %v484_v11 }
  0xf3   : > { %v577_v23 = vadd.f32 %v576_v7, %v477_v15 }
  0xf4   : > { %v967_v12 = vpop.f32.mrf.mxu0  ;;  %v981_v13 = vpop.f32.mrf.mxu1 }
  0xf5   : > { %v674_v16 = vadd.f32 %v967_v12, %v569_v10 }
  0xf6   : > { %v667_v17 = vpop.f32.mrf.mxu0  ;;  %v760_v18 = vpop.f32.mrf.mxu1 }
  0xf7   : > { %v668_v19 = vadd.f32 %v667_v17, %v561_v14  ;;  %v767_v25 = vadd.f32 %v981_v13, %v674_v16 }
  0xf8   : > { %v970_v21 = vpop.f32.mrf.mxu0  ;;  %v984_v22 = vpop.f32.mrf.mxu1 }
  0xf9   : > { %v761_v24 = vadd.f32 %v760_v18, %v668_v19  ;;  %v686_v26 = vadd.f32 %v970_v21, %v585_v20  ;;  %783 = vst [vmem:[%s145_s26 + $0x8] sm:$0xff] %v767_v25 }
  0xfa   : > { %v679_v27 = vpop.f32.mrf.mxu0  ;;  %v772_v29 = vpop.f32.mrf.mxu1 }
  0xfb   : > { %782 = vst [vmem:[%s145_s26] sm:$0xff] %v761_v24  ;;  %v680_v28 = vadd.f32 %v679_v27, %v577_v23  ;;  %v779_v31 = vadd.f32 %v984_v22, %v686_v26 }
  0xfd   : > { %v773_v30 = vadd.f32 %v772_v29, %v680_v28  ;;  %785 = vst [vmem:[%s145_s26 + $0x18] sm:$0xff] %v779_v31 }
  0xff   : > { %784 = vst [vmem:[%s145_s26 + $0x10] sm:$0xff] %v773_v30 }
 0x100 PF: > { %s12_s9 = sadd.s32 1, %s999_s9  }
 0x101   : > { %p9_p4 = scmp.ge.s32.totalorder %s12_s9, 4  }
 0x103   :  { %11 = sbr.rel (!%p9_p4) target bundleno = 1 (0x1), region = 58 }

</bundles_post_ra>
